<compile_context>
chip_gen: v6e
topology: v6e:2x2x1
jax: 0.10.0
libtpu: 0.0.40
codegen_flags: <defaults>
</compile_context>

<pallas_src>
import jax
import jax.numpy as jnp
from jax.experimental import pallas as pl
from jax.experimental.pallas import tpu as pltpu

BN_EPS = 1e-5
NUM_STAGES = 7  # (bn1,L1) (bn2,L2) (bn3,L3) (bn4,L4) (bn5,L5) (bn6,L6) (bn_out,Lout)
LANE = 128


def _round_up(v, m):
    return ((v + m - 1) // m) * m


def _mlp_kernel(x_ref, w_ref, vec_ref, out_ref):
    """x_ref: (N, P) f32, w_ref: (7, P, P) bf16,
    vec_ref: (21, P) f32 with rows 3i / 3i+1 / 3i+2 = gamma / beta / bias of
    stage i, out_ref: (N, P) f32. Everything resident in VMEM."""
    n = x_ref.shape[0]
    inv_n = jnp.float32(1.0 / n)
    vec = vec_ref[...]          # single ~10 KB load, reused by all 7 stages
    h = x_ref[...]              # (N, P) f32
    for i in range(NUM_STAGES):
        gamma = vec[3 * i:3 * i + 1, :]
        beta = vec[3 * i + 1:3 * i + 2, :]
        bias = vec[3 * i + 2:3 * i + 3, :]
        # BatchNorm1d (training mode): single-pass batch stats, biased variance.
        s1 = jnp.sum(h, axis=0, keepdims=True)
        s2 = jnp.sum(h * h, axis=0, keepdims=True)
        mean = s1 * inv_n
        var = s2 * inv_n - mean * mean
        scale = jax.lax.rsqrt(var + BN_EPS) * gamma          # fold gamma into scale
        hn = (h - mean) * scale + beta                       # f32 VPU math
        # Linear: y = hn @ W + b; bf16 operands into the MXU, f32 accumulate.
        h = jnp.dot(hn.astype(jnp.bfloat16), w_ref[i],
                    preferred_element_type=jnp.float32) + bias
    out_ref[...] = h  # lane-dense (N, P) store; wrapper slices the real out_dim


def mlp_forward(x, w_stack, vec_stack, out_dim):
    """x: (N, F) f32; w_stack: (7, P, P) bf16; vec_stack: (21, P) f32."""
    n, f = x.shape
    p = w_stack.shape[-1]
    x_p = jnp.pad(x.astype(jnp.float32), ((0, 0), (0, p - f)))
    vmem = pl.BlockSpec(memory_space=pltpu.MemorySpace.VMEM)
    out_p = pl.pallas_call(
        _mlp_kernel,
        out_shape=jax.ShapeDtypeStruct((n, p), jnp.float32),
        in_specs=[vmem, vmem, vmem],
        out_specs=vmem,
    )(x_p, w_stack, vec_stack)
    return out_p[:, :out_dim]


# ----------------------------- parameter setup ------------------------------

def stage_dims(input_dim, hidden_dim, output_dim):
    half = hidden_dim // 2
    # (bn_features, linear_in, linear_out) per stage.
    return [
        (input_dim, input_dim, hidden_dim),    # bn1, layer1
        (hidden_dim, hidden_dim, hidden_dim),  # bn2, layer2
        (hidden_dim, hidden_dim, hidden_dim),  # bn3, layer3
        (hidden_dim, hidden_dim, half),        # bn4, layer4
        (half, half, half),                    # bn5, layer5
        (half, half, half),                    # bn6, layer6 (synthesized)
        (half, half, output_dim),              # bn_out, output_layer
    ]


def _linear_params(key, fan_in, fan_out):
    """PyTorch nn.Linear default init: U(-1/sqrt(fan_in), 1/sqrt(fan_in))."""
    kw, kb = jax.random.split(key)
    bound = 1.0 / jnp.sqrt(fan_in)
    w = jax.random.uniform(kw, (fan_in, fan_out), jnp.float32, -bound, bound)
    b = jax.random.uniform(kb, (1, fan_out), jnp.float32, -bound, bound)
    return w, b


def build_params(key, dims):
    """Raw per-stage params: flat list [gamma, beta, W(in,out), b] * 7 (f32)."""
    params = []
    keys = jax.random.split(key, len(dims) * 2)
    for i, (bn_f, lin_in, lin_out) in enumerate(dims):
        gamma = 1.0 + 0.1 * jax.random.normal(keys[2 * i], (1, bn_f), jnp.float32)
        beta = 0.1 * jax.random.normal(keys[2 * i + 1], (1, bn_f), jnp.float32)
        w, b = _linear_params(jax.random.fold_in(key, 100 + i), lin_in, lin_out)
        params += [gamma, beta, w, b]
    return params


def pack_params(params, dims):
    """Zero-pad every feature dim to a common lane width P and pack:
    weights -> (7, P, P) bf16 stack; gamma/beta/bias -> (21, P) f32 stack.
    Zero padding is exact: padded BN columns normalize to 0 (beta pad = 0) and
    padded weight rows/cols and bias are 0, so padded activations stay 0."""
    p = _round_up(max(max(d[1], d[2]) for d in dims), LANE)
    w_stack = jnp.zeros((NUM_STAGES, p, p), jnp.bfloat16)
    vec_stack = jnp.zeros((3 * NUM_STAGES, p), jnp.float32)
    for i, (bn_f, lin_in, lin_out) in enumerate(dims):
        gamma, beta, w, b = params[4 * i:4 * i + 4]
        w_stack = w_stack.at[i, :lin_in, :lin_out].set(w.astype(jnp.bfloat16))
        vec_stack = vec_stack.at[3 * i, :bn_f].set(gamma[0])
        vec_stack = vec_stack.at[3 * i + 1, :bn_f].set(beta[0])
        vec_stack = vec_stack.at[3 * i + 2, :lin_out].set(b[0])
    return w_stack, vec_stack, p


def reference_forward(x, params):
    """Pure-JAX reference (same bf16-weight / f32-accumulate matmul path)."""
    h = x.astype(jnp.float32)
    for i in range(NUM_STAGES):
        g, beta, w, b = params[4 * i:4 * i + 4]
        mean = jnp.mean(h, axis=0, keepdims=True)
        var = jnp.mean((h - mean) ** 2, axis=0, keepdims=True)
        h = (h - mean) / jnp.sqrt(var + BN_EPS) * g + beta
        h = jnp.dot(h.astype(jnp.bfloat16), w.astype(jnp.bfloat16),
                    preferred_element_type=jnp.float32) + b
    return h


if __name__ == "__main__":
    input_dim, hidden_dim, output_dim = 16, 32, 8
    batch = 8  # multiple of 8 sublanes

    key = jax.random.PRNGKey(0)
    kx, kp = jax.random.split(key)
    x = jax.random.normal(kx, (batch, input_dim), jnp.float32)

    dims = stage_dims(input_dim, hidden_dim, output_dim)
    params = build_params(kp, dims)
    w_stack, vec_stack, _ = pack_params(params, dims)

    out = mlp_forward(x, w_stack, vec_stack, output_dim)
    out = jax.block_until_ready(out)

    ref = reference_forward(x, params)
    assert out.shape == (batch, output_dim)
    assert jnp.allclose(out, ref, atol=2e-3, rtol=2e-3), "mismatch vs reference"

    print("KERNEL_OK")
</pallas_src>

<mosaic_0001>
module attributes {stable_mosaic.version = 11 : i64} {
  func.func @_mlp_kernel(%arg0: memref<8x128xf32, #tpu.memory_space<vmem>>, %arg1: memref<7x128x128xbf16, #tpu.memory_space<vmem>>, %arg2: memref<21x128xf32, #tpu.memory_space<vmem>>, %arg3: memref<8x128xf32, #tpu.memory_space<vmem>>) attributes {dimension_semantics = [], scalar_prefetch = 0 : i64, scratch_operands = 0 : i64, tpu.core_type = #tpu.core_type<tc>} {
    %c0 = arith.constant 0 : index
    %c0_0 = arith.constant 0 : index
    %0 = vector.load %arg2[%c0, %c0_0] : memref<21x128xf32, #tpu.memory_space<vmem>>, vector<21x128xf32>
    %c0_1 = arith.constant 0 : index
    %c0_2 = arith.constant 0 : index
    %1 = vector.load %arg0[%c0_1, %c0_2] : memref<8x128xf32, #tpu.memory_space<vmem>>, vector<8x128xf32>
    %2 = vector.extract_strided_slice %0 {offsets = [0, 0], sizes = [1, 128], strides = [1, 1]} : vector<21x128xf32> to vector<1x128xf32>
    %3 = vector.extract_strided_slice %0 {offsets = [1, 0], sizes = [1, 128], strides = [1, 1]} : vector<21x128xf32> to vector<1x128xf32>
    %4 = vector.extract_strided_slice %0 {offsets = [2, 0], sizes = [1, 128], strides = [1, 1]} : vector<21x128xf32> to vector<1x128xf32>
    %cst = arith.constant dense<0.000000e+00> : vector<128xf32>
    %5 = vector.multi_reduction <add>, %1, %cst [0] : vector<8x128xf32> to vector<128xf32>
    %6 = vector.shape_cast %5 : vector<128xf32> to vector<1x128xf32>
    %7 = arith.mulf %1, %1 : vector<8x128xf32>
    %cst_3 = arith.constant dense<0.000000e+00> : vector<128xf32>
    %8 = vector.multi_reduction <add>, %7, %cst_3 [0] : vector<8x128xf32> to vector<128xf32>
    %9 = vector.shape_cast %8 : vector<128xf32> to vector<1x128xf32>
    %cst_4 = arith.constant 1.250000e-01 : f32
    %10 = vector.broadcast %cst_4 : f32 to vector<1x128xf32>
    %11 = arith.mulf %6, %10 : vector<1x128xf32>
    %cst_5 = arith.constant 1.250000e-01 : f32
    %12 = vector.broadcast %cst_5 : f32 to vector<1x128xf32>
    %13 = arith.mulf %9, %12 : vector<1x128xf32>
    %14 = arith.mulf %11, %11 : vector<1x128xf32>
    %15 = arith.subf %13, %14 : vector<1x128xf32>
    %cst_6 = arith.constant 9.99999974E-6 : f32
    %16 = vector.broadcast %cst_6 : f32 to vector<1x128xf32>
    %17 = arith.addf %15, %16 : vector<1x128xf32>
    %18 = math.rsqrt %17 : vector<1x128xf32>
    %19 = arith.mulf %18, %2 : vector<1x128xf32>
    %20 = vector.broadcast %11 : vector<1x128xf32> to vector<8x128xf32>
    %21 = arith.subf %1, %20 : vector<8x128xf32>
    %22 = vector.broadcast %19 : vector<1x128xf32> to vector<8x128xf32>
    %23 = arith.mulf %21, %22 : vector<8x128xf32>
    %24 = vector.broadcast %3 : vector<1x128xf32> to vector<8x128xf32>
    %25 = arith.addf %23, %24 : vector<8x128xf32>
    %26 = arith.truncf %25 : vector<8x128xf32> to vector<8x128xbf16>
    %c0_7 = arith.constant 0 : index
    %c0_8 = arith.constant 0 : index
    %c0_9 = arith.constant 0 : index
    %27 = vector.load %arg1[%c0_7, %c0_8, %c0_9] : memref<7x128x128xbf16, #tpu.memory_space<vmem>>, vector<1x128x128xbf16>
    %28 = vector.shape_cast %27 : vector<1x128x128xbf16> to vector<128x128xbf16>
    %cst_10 = arith.constant dense<0.000000e+00> : vector<8x128xf32>
    %29 = tpu.matmul %26, %28, %cst_10 {dimension_numbers = #tpu.dot_dimension_numbers<[1], [0], [0], [1], [0, 0, 1, 1], [], []>} : vector<8x128xbf16>, vector<128x128xbf16>, vector<8x128xf32> -> vector<8x128xf32>
    %30 = vector.broadcast %4 : vector<1x128xf32> to vector<8x128xf32>
    %31 = arith.addf %29, %30 : vector<8x128xf32>
    %32 = vector.extract_strided_slice %0 {offsets = [3, 0], sizes = [1, 128], strides = [1, 1]} : vector<21x128xf32> to vector<1x128xf32>
    %33 = vector.extract_strided_slice %0 {offsets = [4, 0], sizes = [1, 128], strides = [1, 1]} : vector<21x128xf32> to vector<1x128xf32>
    %34 = vector.extract_strided_slice %0 {offsets = [5, 0], sizes = [1, 128], strides = [1, 1]} : vector<21x128xf32> to vector<1x128xf32>
    %cst_11 = arith.constant dense<0.000000e+00> : vector<128xf32>
    %35 = vector.multi_reduction <add>, %31, %cst_11 [0] : vector<8x128xf32> to vector<128xf32>
    %36 = vector.shape_cast %35 : vector<128xf32> to vector<1x128xf32>
    %37 = arith.mulf %31, %31 : vector<8x128xf32>
    %cst_12 = arith.constant dense<0.000000e+00> : vector<128xf32>
    %38 = vector.multi_reduction <add>, %37, %cst_12 [0] : vector<8x128xf32> to vector<128xf32>
    %39 = vector.shape_cast %38 : vector<128xf32> to vector<1x128xf32>
    %cst_13 = arith.constant 1.250000e-01 : f32
    %40 = vector.broadcast %cst_13 : f32 to vector<1x128xf32>
    %41 = arith.mulf %36, %40 : vector<1x128xf32>
    %cst_14 = arith.constant 1.250000e-01 : f32
    %42 = vector.broadcast %cst_14 : f32 to vector<1x128xf32>
    %43 = arith.mulf %39, %42 : vector<1x128xf32>
    %44 = arith.mulf %41, %41 : vector<1x128xf32>
    %45 = arith.subf %43, %44 : vector<1x128xf32>
    %cst_15 = arith.constant 9.99999974E-6 : f32
    %46 = vector.broadcast %cst_15 : f32 to vector<1x128xf32>
    %47 = arith.addf %45, %46 : vector<1x128xf32>
    %48 = math.rsqrt %47 : vector<1x128xf32>
    %49 = arith.mulf %48, %32 : vector<1x128xf32>
    %50 = vector.broadcast %41 : vector<1x128xf32> to vector<8x128xf32>
    %51 = arith.subf %31, %50 : vector<8x128xf32>
    %52 = vector.broadcast %49 : vector<1x128xf32> to vector<8x128xf32>
    %53 = arith.mulf %51, %52 : vector<8x128xf32>
    %54 = vector.broadcast %33 : vector<1x128xf32> to vector<8x128xf32>
    %55 = arith.addf %53, %54 : vector<8x128xf32>
    %56 = arith.truncf %55 : vector<8x128xf32> to vector<8x128xbf16>
    %c1 = arith.constant 1 : index
    %c0_16 = arith.constant 0 : index
    %c0_17 = arith.constant 0 : index
    %57 = vector.load %arg1[%c1, %c0_16, %c0_17] : memref<7x128x128xbf16, #tpu.memory_space<vmem>>, vector<1x128x128xbf16>
    %58 = vector.shape_cast %57 : vector<1x128x128xbf16> to vector<128x128xbf16>
    %cst_18 = arith.constant dense<0.000000e+00> : vector<8x128xf32>
    %59 = tpu.matmul %56, %58, %cst_18 {dimension_numbers = #tpu.dot_dimension_numbers<[1], [0], [0], [1], [0, 0, 1, 1], [], []>} : vector<8x128xbf16>, vector<128x128xbf16>, vector<8x128xf32> -> vector<8x128xf32>
    %60 = vector.broadcast %34 : vector<1x128xf32> to vector<8x128xf32>
    %61 = arith.addf %59, %60 : vector<8x128xf32>
    %62 = vector.extract_strided_slice %0 {offsets = [6, 0], sizes = [1, 128], strides = [1, 1]} : vector<21x128xf32> to vector<1x128xf32>
    %63 = vector.extract_strided_slice %0 {offsets = [7, 0], sizes = [1, 128], strides = [1, 1]} : vector<21x128xf32> to vector<1x128xf32>
    %64 = vector.extract_strided_slice %0 {offsets = [8, 0], sizes = [1, 128], strides = [1, 1]} : vector<21x128xf32> to vector<1x128xf32>
    %cst_19 = arith.constant dense<0.000000e+00> : vector<128xf32>
    %65 = vector.multi_reduction <add>, %61, %cst_19 [0] : vector<8x128xf32> to vector<128xf32>
    %66 = vector.shape_cast %65 : vector<128xf32> to vector<1x128xf32>
    %67 = arith.mulf %61, %61 : vector<8x128xf32>
    %cst_20 = arith.constant dense<0.000000e+00> : vector<128xf32>
    %68 = vector.multi_reduction <add>, %67, %cst_20 [0] : vector<8x128xf32> to vector<128xf32>
    %69 = vector.shape_cast %68 : vector<128xf32> to vector<1x128xf32>
    %cst_21 = arith.constant 1.250000e-01 : f32
    %70 = vector.broadcast %cst_21 : f32 to vector<1x128xf32>
    %71 = arith.mulf %66, %70 : vector<1x128xf32>
    %cst_22 = arith.constant 1.250000e-01 : f32
    %72 = vector.broadcast %cst_22 : f32 to vector<1x128xf32>
    %73 = arith.mulf %69, %72 : vector<1x128xf32>
    %74 = arith.mulf %71, %71 : vector<1x128xf32>
    %75 = arith.subf %73, %74 : vector<1x128xf32>
    %cst_23 = arith.constant 9.99999974E-6 : f32
    %76 = vector.broadcast %cst_23 : f32 to vector<1x128xf32>
    %77 = arith.addf %75, %76 : vector<1x128xf32>
    %78 = math.rsqrt %77 : vector<1x128xf32>
    %79 = arith.mulf %78, %62 : vector<1x128xf32>
    %80 = vector.broadcast %71 : vector<1x128xf32> to vector<8x128xf32>
    %81 = arith.subf %61, %80 : vector<8x128xf32>
    %82 = vector.broadcast %79 : vector<1x128xf32> to vector<8x128xf32>
    %83 = arith.mulf %81, %82 : vector<8x128xf32>
    %84 = vector.broadcast %63 : vector<1x128xf32> to vector<8x128xf32>
    %85 = arith.addf %83, %84 : vector<8x128xf32>
    %86 = arith.truncf %85 : vector<8x128xf32> to vector<8x128xbf16>
    %c2 = arith.constant 2 : index
    %c0_24 = arith.constant 0 : index
    %c0_25 = arith.constant 0 : index
    %87 = vector.load %arg1[%c2, %c0_24, %c0_25] : memref<7x128x128xbf16, #tpu.memory_space<vmem>>, vector<1x128x128xbf16>
    %88 = vector.shape_cast %87 : vector<1x128x128xbf16> to vector<128x128xbf16>
    %cst_26 = arith.constant dense<0.000000e+00> : vector<8x128xf32>
    %89 = tpu.matmul %86, %88, %cst_26 {dimension_numbers = #tpu.dot_dimension_numbers<[1], [0], [0], [1], [0, 0, 1, 1], [], []>} : vector<8x128xbf16>, vector<128x128xbf16>, vector<8x128xf32> -> vector<8x128xf32>
    %90 = vector.broadcast %64 : vector<1x128xf32> to vector<8x128xf32>
    %91 = arith.addf %89, %90 : vector<8x128xf32>
    %92 = vector.extract_strided_slice %0 {offsets = [9, 0], sizes = [1, 128], strides = [1, 1]} : vector<21x128xf32> to vector<1x128xf32>
    %93 = vector.extract_strided_slice %0 {offsets = [10, 0], sizes = [1, 128], strides = [1, 1]} : vector<21x128xf32> to vector<1x128xf32>
    %94 = vector.extract_strided_slice %0 {offsets = [11, 0], sizes = [1, 128], strides = [1, 1]} : vector<21x128xf32> to vector<1x128xf32>
    %cst_27 = arith.constant dense<0.000000e+00> : vector<128xf32>
    %95 = vector.multi_reduction <add>, %91, %cst_27 [0] : vector<8x128xf32> to vector<128xf32>
    %96 = vector.shape_cast %95 : vector<128xf32> to vector<1x128xf32>
    %97 = arith.mulf %91, %91 : vector<8x128xf32>
    %cst_28 = arith.constant dense<0.000000e+00> : vector<128xf32>
    %98 = vector.multi_reduction <add>, %97, %cst_28 [0] : vector<8x128xf32> to vector<128xf32>
    %99 = vector.shape_cast %98 : vector<128xf32> to vector<1x128xf32>
    %cst_29 = arith.constant 1.250000e-01 : f32
    %100 = vector.broadcast %cst_29 : f32 to vector<1x128xf32>
    %101 = arith.mulf %96, %100 : vector<1x128xf32>
    %cst_30 = arith.constant 1.250000e-01 : f32
    %102 = vector.broadcast %cst_30 : f32 to vector<1x128xf32>
    %103 = arith.mulf %99, %102 : vector<1x128xf32>
    %104 = arith.mulf %101, %101 : vector<1x128xf32>
    %105 = arith.subf %103, %104 : vector<1x128xf32>
    %cst_31 = arith.constant 9.99999974E-6 : f32
    %106 = vector.broadcast %cst_31 : f32 to vector<1x128xf32>
    %107 = arith.addf %105, %106 : vector<1x128xf32>
    %108 = math.rsqrt %107 : vector<1x128xf32>
    %109 = arith.mulf %108, %92 : vector<1x128xf32>
    %110 = vector.broadcast %101 : vector<1x128xf32> to vector<8x128xf32>
    %111 = arith.subf %91, %110 : vector<8x128xf32>
    %112 = vector.broadcast %109 : vector<1x128xf32> to vector<8x128xf32>
    %113 = arith.mulf %111, %112 : vector<8x128xf32>
    %114 = vector.broadcast %93 : vector<1x128xf32> to vector<8x128xf32>
    %115 = arith.addf %113, %114 : vector<8x128xf32>
    %116 = arith.truncf %115 : vector<8x128xf32> to vector<8x128xbf16>
    %c3 = arith.constant 3 : index
    %c0_32 = arith.constant 0 : index
    %c0_33 = arith.constant 0 : index
    %117 = vector.load %arg1[%c3, %c0_32, %c0_33] : memref<7x128x128xbf16, #tpu.memory_space<vmem>>, vector<1x128x128xbf16>
    %118 = vector.shape_cast %117 : vector<1x128x128xbf16> to vector<128x128xbf16>
    %cst_34 = arith.constant dense<0.000000e+00> : vector<8x128xf32>
    %119 = tpu.matmul %116, %118, %cst_34 {dimension_numbers = #tpu.dot_dimension_numbers<[1], [0], [0], [1], [0, 0, 1, 1], [], []>} : vector<8x128xbf16>, vector<128x128xbf16>, vector<8x128xf32> -> vector<8x128xf32>
    %120 = vector.broadcast %94 : vector<1x128xf32> to vector<8x128xf32>
    %121 = arith.addf %119, %120 : vector<8x128xf32>
    %122 = vector.extract_strided_slice %0 {offsets = [12, 0], sizes = [1, 128], strides = [1, 1]} : vector<21x128xf32> to vector<1x128xf32>
    %123 = vector.extract_strided_slice %0 {offsets = [13, 0], sizes = [1, 128], strides = [1, 1]} : vector<21x128xf32> to vector<1x128xf32>
    %124 = vector.extract_strided_slice %0 {offsets = [14, 0], sizes = [1, 128], strides = [1, 1]} : vector<21x128xf32> to vector<1x128xf32>
    %cst_35 = arith.constant dense<0.000000e+00> : vector<128xf32>
    %125 = vector.multi_reduction <add>, %121, %cst_35 [0] : vector<8x128xf32> to vector<128xf32>
    %126 = vector.shape_cast %125 : vector<128xf32> to vector<1x128xf32>
    %127 = arith.mulf %121, %121 : vector<8x128xf32>
    %cst_36 = arith.constant dense<0.000000e+00> : vector<128xf32>
    %128 = vector.multi_reduction <add>, %127, %cst_36 [0] : vector<8x128xf32> to vector<128xf32>
    %129 = vector.shape_cast %128 : vector<128xf32> to vector<1x128xf32>
    %cst_37 = arith.constant 1.250000e-01 : f32
    %130 = vector.broadcast %cst_37 : f32 to vector<1x128xf32>
    %131 = arith.mulf %126, %130 : vector<1x128xf32>
    %cst_38 = arith.constant 1.250000e-01 : f32
    %132 = vector.broadcast %cst_38 : f32 to vector<1x128xf32>
    %133 = arith.mulf %129, %132 : vector<1x128xf32>
    %134 = arith.mulf %131, %131 : vector<1x128xf32>
    %135 = arith.subf %133, %134 : vector<1x128xf32>
    %cst_39 = arith.constant 9.99999974E-6 : f32
    %136 = vector.broadcast %cst_39 : f32 to vector<1x128xf32>
    %137 = arith.addf %135, %136 : vector<1x128xf32>
    %138 = math.rsqrt %137 : vector<1x128xf32>
    %139 = arith.mulf %138, %122 : vector<1x128xf32>
    %140 = vector.broadcast %131 : vector<1x128xf32> to vector<8x128xf32>
    %141 = arith.subf %121, %140 : vector<8x128xf32>
    %142 = vector.broadcast %139 : vector<1x128xf32> to vector<8x128xf32>
    %143 = arith.mulf %141, %142 : vector<8x128xf32>
    %144 = vector.broadcast %123 : vector<1x128xf32> to vector<8x128xf32>
    %145 = arith.addf %143, %144 : vector<8x128xf32>
    %146 = arith.truncf %145 : vector<8x128xf32> to vector<8x128xbf16>
    %c4 = arith.constant 4 : index
    %c0_40 = arith.constant 0 : index
    %c0_41 = arith.constant 0 : index
    %147 = vector.load %arg1[%c4, %c0_40, %c0_41] : memref<7x128x128xbf16, #tpu.memory_space<vmem>>, vector<1x128x128xbf16>
    %148 = vector.shape_cast %147 : vector<1x128x128xbf16> to vector<128x128xbf16>
    %cst_42 = arith.constant dense<0.000000e+00> : vector<8x128xf32>
    %149 = tpu.matmul %146, %148, %cst_42 {dimension_numbers = #tpu.dot_dimension_numbers<[1], [0], [0], [1], [0, 0, 1, 1], [], []>} : vector<8x128xbf16>, vector<128x128xbf16>, vector<8x128xf32> -> vector<8x128xf32>
    %150 = vector.broadcast %124 : vector<1x128xf32> to vector<8x128xf32>
    %151 = arith.addf %149, %150 : vector<8x128xf32>
    %152 = vector.extract_strided_slice %0 {offsets = [15, 0], sizes = [1, 128], strides = [1, 1]} : vector<21x128xf32> to vector<1x128xf32>
    %153 = vector.extract_strided_slice %0 {offsets = [16, 0], sizes = [1, 128], strides = [1, 1]} : vector<21x128xf32> to vector<1x128xf32>
    %154 = vector.extract_strided_slice %0 {offsets = [17, 0], sizes = [1, 128], strides = [1, 1]} : vector<21x128xf32> to vector<1x128xf32>
    %cst_43 = arith.constant dense<0.000000e+00> : vector<128xf32>
    %155 = vector.multi_reduction <add>, %151, %cst_43 [0] : vector<8x128xf32> to vector<128xf32>
    %156 = vector.shape_cast %155 : vector<128xf32> to vector<1x128xf32>
    %157 = arith.mulf %151, %151 : vector<8x128xf32>
    %cst_44 = arith.constant dense<0.000000e+00> : vector<128xf32>
    %158 = vector.multi_reduction <add>, %157, %cst_44 [0] : vector<8x128xf32> to vector<128xf32>
    %159 = vector.shape_cast %158 : vector<128xf32> to vector<1x128xf32>
    %cst_45 = arith.constant 1.250000e-01 : f32
    %160 = vector.broadcast %cst_45 : f32 to vector<1x128xf32>
    %161 = arith.mulf %156, %160 : vector<1x128xf32>
    %cst_46 = arith.constant 1.250000e-01 : f32
    %162 = vector.broadcast %cst_46 : f32 to vector<1x128xf32>
    %163 = arith.mulf %159, %162 : vector<1x128xf32>
    %164 = arith.mulf %161, %161 : vector<1x128xf32>
    %165 = arith.subf %163, %164 : vector<1x128xf32>
    %cst_47 = arith.constant 9.99999974E-6 : f32
    %166 = vector.broadcast %cst_47 : f32 to vector<1x128xf32>
    %167 = arith.addf %165, %166 : vector<1x128xf32>
    %168 = math.rsqrt %167 : vector<1x128xf32>
    %169 = arith.mulf %168, %152 : vector<1x128xf32>
    %170 = vector.broadcast %161 : vector<1x128xf32> to vector<8x128xf32>
    %171 = arith.subf %151, %170 : vector<8x128xf32>
    %172 = vector.broadcast %169 : vector<1x128xf32> to vector<8x128xf32>
    %173 = arith.mulf %171, %172 : vector<8x128xf32>
    %174 = vector.broadcast %153 : vector<1x128xf32> to vector<8x128xf32>
    %175 = arith.addf %173, %174 : vector<8x128xf32>
    %176 = arith.truncf %175 : vector<8x128xf32> to vector<8x128xbf16>
    %c5 = arith.constant 5 : index
    %c0_48 = arith.constant 0 : index
    %c0_49 = arith.constant 0 : index
    %177 = vector.load %arg1[%c5, %c0_48, %c0_49] : memref<7x128x128xbf16, #tpu.memory_space<vmem>>, vector<1x128x128xbf16>
    %178 = vector.shape_cast %177 : vector<1x128x128xbf16> to vector<128x128xbf16>
    %cst_50 = arith.constant dense<0.000000e+00> : vector<8x128xf32>
    %179 = tpu.matmul %176, %178, %cst_50 {dimension_numbers = #tpu.dot_dimension_numbers<[1], [0], [0], [1], [0, 0, 1, 1], [], []>} : vector<8x128xbf16>, vector<128x128xbf16>, vector<8x128xf32> -> vector<8x128xf32>
    %180 = vector.broadcast %154 : vector<1x128xf32> to vector<8x128xf32>
    %181 = arith.addf %179, %180 : vector<8x128xf32>
    %182 = vector.extract_strided_slice %0 {offsets = [18, 0], sizes = [1, 128], strides = [1, 1]} : vector<21x128xf32> to vector<1x128xf32>
    %183 = vector.extract_strided_slice %0 {offsets = [19, 0], sizes = [1, 128], strides = [1, 1]} : vector<21x128xf32> to vector<1x128xf32>
    %184 = vector.extract_strided_slice %0 {offsets = [20, 0], sizes = [1, 128], strides = [1, 1]} : vector<21x128xf32> to vector<1x128xf32>
    %cst_51 = arith.constant dense<0.000000e+00> : vector<128xf32>
    %185 = vector.multi_reduction <add>, %181, %cst_51 [0] : vector<8x128xf32> to vector<128xf32>
    %186 = vector.shape_cast %185 : vector<128xf32> to vector<1x128xf32>
    %187 = arith.mulf %181, %181 : vector<8x128xf32>
    %cst_52 = arith.constant dense<0.000000e+00> : vector<128xf32>
    %188 = vector.multi_reduction <add>, %187, %cst_52 [0] : vector<8x128xf32> to vector<128xf32>
    %189 = vector.shape_cast %188 : vector<128xf32> to vector<1x128xf32>
    %cst_53 = arith.constant 1.250000e-01 : f32
    %190 = vector.broadcast %cst_53 : f32 to vector<1x128xf32>
    %191 = arith.mulf %186, %190 : vector<1x128xf32>
    %cst_54 = arith.constant 1.250000e-01 : f32
    %192 = vector.broadcast %cst_54 : f32 to vector<1x128xf32>
    %193 = arith.mulf %189, %192 : vector<1x128xf32>
    %194 = arith.mulf %191, %191 : vector<1x128xf32>
    %195 = arith.subf %193, %194 : vector<1x128xf32>
    %cst_55 = arith.constant 9.99999974E-6 : f32
    %196 = vector.broadcast %cst_55 : f32 to vector<1x128xf32>
    %197 = arith.addf %195, %196 : vector<1x128xf32>
    %198 = math.rsqrt %197 : vector<1x128xf32>
    %199 = arith.mulf %198, %182 : vector<1x128xf32>
    %200 = vector.broadcast %191 : vector<1x128xf32> to vector<8x128xf32>
    %201 = arith.subf %181, %200 : vector<8x128xf32>
    %202 = vector.broadcast %199 : vector<1x128xf32> to vector<8x128xf32>
    %203 = arith.mulf %201, %202 : vector<8x128xf32>
    %204 = vector.broadcast %183 : vector<1x128xf32> to vector<8x128xf32>
    %205 = arith.addf %203, %204 : vector<8x128xf32>
    %206 = arith.truncf %205 : vector<8x128xf32> to vector<8x128xbf16>
    %c6 = arith.constant 6 : index
    %c0_56 = arith.constant 0 : index
    %c0_57 = arith.constant 0 : index
    %207 = vector.load %arg1[%c6, %c0_56, %c0_57] : memref<7x128x128xbf16, #tpu.memory_space<vmem>>, vector<1x128x128xbf16>
    %208 = vector.shape_cast %207 : vector<1x128x128xbf16> to vector<128x128xbf16>
    %cst_58 = arith.constant dense<0.000000e+00> : vector<8x128xf32>
    %209 = tpu.matmul %206, %208, %cst_58 {dimension_numbers = #tpu.dot_dimension_numbers<[1], [0], [0], [1], [0, 0, 1, 1], [], []>} : vector<8x128xbf16>, vector<128x128xbf16>, vector<8x128xf32> -> vector<8x128xf32>
    %210 = vector.broadcast %184 : vector<1x128xf32> to vector<8x128xf32>
    %211 = arith.addf %209, %210 : vector<8x128xf32>
    %c0_59 = arith.constant 0 : index
    %c0_60 = arith.constant 0 : index
    %212 = vector.load %arg3[%c0_59, %c0_60] : memref<8x128xf32, #tpu.memory_space<vmem>>, vector<8x128xf32>
    tpu.vector_store %arg3[%c0_59, %c0_60], %211 {strides = array<i32>} : memref<8x128xf32, #tpu.memory_space<vmem>>, vector<8x128xf32>,
    return
  }
}

</mosaic_0001>

<bundles_post_ra>
// kernel: tpu_custom_call.1
= control target key start
LH: loop header
LB: loop body
LE: loop exit
PB: predicated region body
PF: predicated region fallthrough
CT: control target
= control target key end

     0   :  { %8 = vsyncpa [#allocation3], 0  ;;  %s1673_s0 = inlined_call_operand.hbm [shape: f32[8,128], index: 0, kind: input, shape index: {}]   ;;  %s1674_s1 = inlined_call_operand.hbm [shape: bf16[7,128,128], index: 1, kind: input, shape index: {}]   ;;  %s1675_s2 = inlined_call_operand.hbm [shape: f32[21,128], index: 2, kind: input, shape index: {}]   ;;  %s1676_s3 = inlined_call_operand.hbm [shape: f32[8,128], index: 3, kind: output, shape index: {}]  }
   0x1   :  { %9 = vsyncpa [#allocation6], 0 }
   0x2   :  { %10 = vsyncpa [#allocation4], 0  ;;  %s1487_s12 = smov [#allocation5]  }
   0x3   :  { %s26_s13 = sshll.u32 %s1487_s12, 4  ;;  %s27_s13 = int_to_ptr.vmem [resolvable:$true] %s26_s13 }
   0x4   :  { %s1409_s14 = scalar_lea.vmem %s27_s13, 7168  ;;  %p1414_p1 = scmp.lt.s32.totalorder %s27_s13, %s27_s13 }
   0x5   :  { %p1410_p0 = scmp.ne.s32.totalorder %s27_s13, %s1409_s14  ;;  %p1415_p2 = scmp.lt.s32.totalorder %s1409_s14, %s1409_s14 }
   0x7   :  { %p1416_p3 = por %p1415_p2, %p1414_p1 }
   0x9   :  { %p1417_p4 = pnand %p1416_p3, %p1410_p0 }
   0xb   :  { %1420 = shalt.err (!%p1417_p4)
}
   0xc   :  { %s1488_s15 = smov 64   ;;  %s1489_s16 = smov 4  }
   0xd   :  { %32 = dma.hbm_to_vmem [thread:$0]  %s1674_s1, 7168, %s27_s13, [#allocation6], %s1488_s15, %s1488_s15, %s1489_s16  }
   0xe   :  { %s1490_s19 = smov [#allocation2]   ;;  %s1491_s21 = smov [#allocation7]  }
   0xf   :  { %s17_s20 = sshll.u32 %s1490_s19, 4  ;;  %s38_s22 = sshll.u32 %s1491_s21, 4  ;;  %s18_s20 = int_to_ptr.vmem [resolvable:$true] %s17_s20  ;;  %s39_s22 = int_to_ptr.vmem [resolvable:$true] %s38_s22 }
  0x10   :  { %s1429_s23 = scalar_lea.vmem %s18_s20, 128  ;;  %p1434_p6 = scmp.lt.s32.totalorder %s18_s20, %s18_s20 }
  0x11   :  { %p1430_p5 = scmp.ne.s32.totalorder %s18_s20, %s1429_s23  ;;  %p1435_p7 = scmp.lt.s32.totalorder %s1429_s23, %s1429_s23 }
  0x13   :  { %p1436_p8 = por %p1435_p7, %p1434_p6 }
  0x15   :  { %p1437_p9 = pnand %p1436_p8, %p1430_p5 }
  0x17   :  { %1440 = shalt.err (!%p1437_p9)
}
  0x18   :  { %20 = dma.hbm_to_vmem [thread:$0]  %s1673_s0, 128, %s18_s20, [#allocation3]  }
  0x19   :  { %s1449_s26 = scalar_lea.vmem %s39_s22, 384  ;;  %p1454_p11 = scmp.lt.s32.totalorder %s39_s22, %s39_s22 }
  0x1a   :  { %p1450_p10 = scmp.ne.s32.totalorder %s39_s22, %s1449_s26  ;;  %p1455_p12 = scmp.lt.s32.totalorder %s1449_s26, %s1449_s26 }
  0x1c   :  { %p1456_p13 = por %p1455_p12, %p1454_p11 }
  0x1e   :  { %p1457_p0 = pnand %p1456_p13, %p1450_p10 }
  0x20   :  { %1460 = shalt.err (!%p1457_p0)
}
  0x21   :  { %s1492_s1 = smov 128   ;;  %s1493_s27 = smov 8  }
  0x22   :  { %44 = dma.hbm_to_vmem [thread:$0]  %s1675_s2, 384, %s39_s22, [#allocation6], %s1492_s1, %s1492_s1, %s1493_s27  }
  0x23   :  { %1481 = dma.done.wait [#allocation3], 128  }
  0x24   :  { %1482 = vsyncadd [#allocation3], 4294967168 }
  0x25   :  { %1483 = dma.done.wait [#allocation6], 7552  }
  0x26   :  { %1484 = vsyncadd [#allocation6], 4294959744  ;;  %v1494_v0 = vmov 0.0   ;;  %vm1495_vm0 = vmmov 0   ;;  %v1331_v1 = vld [vmem:[#allocation5 + $0x38] sm:$0xff]   ;;  %v1332_v2 = vld [vmem:[#allocation5 + $0x30] sm:$0xff]   ;;  %v80_v10 = vlaneseq }
  0x27   :  { %1181 = vmatprep.subr.bf16.mxu0 %v1494_v0  ;;  %1197 = vmatprep.mubr.msk.bf16.mxu0 %vm1495_vm0, %v1494_v0  ;;  %v1333_v3 = vld [vmem:[#allocation5 + $0x28] sm:$0xff]   ;;  %v58_v4 = vld [vmem:[#allocation2] sm:$0xff]  ;;  %v1334_v5 = vld [vmem:[#allocation5 + $0x20] sm:$0xff]   ;;  %s1496_s0 = smov [#allocation8]  }
  0x28   :  { %1201 = vmatprep.subr.bf16.mxu1 %v1494_v0  ;;  %1217 = vmatprep.mubr.msk.bf16.mxu1 %vm1495_vm0, %v1494_v0  ;;  %v59_v6 = vrot.slane %v58_v4, 4  ;;  %v65_v7 = vmul.f32 %v58_v4, %v58_v4  ;;  %v1335_v11 = vld [vmem:[#allocation5 + $0x18] sm:$0xff]   ;;  %v1536_v16 = vshrl.u32 %v80_v10, 7  ;;  %v1336_v17 = vld [vmem:[#allocation5 + $0x10] sm:$0xff]   ;;  %v1337_v23 = vld [vmem:[#allocation5 + $0x8] sm:$0xff]   ;;  %s1052_s2 = sshll.u32 %s1496_s0, 4  ;;  %s1053_s2 = int_to_ptr.vmem [resolvable:$true] %s1052_s2 }
  0x29   :  { %1182 = vmatpush3.bf16.msra.mxu0 %v1331_v1  ;;  %v1338_v29 = vld [vmem:[#allocation5] sm:$0xff]   ;;  %v1339_v41 = vld [vmem:[#allocation5 + $0x78] sm:$0xff]   ;;  %v1340_v42 = vld [vmem:[#allocation5 + $0x70] sm:$0xff]   ;;  %s1461_s30 = scalar_lea.vmem %s1053_s2, 128  ;;  %p1466_p2 = scmp.lt.s32.totalorder %s1053_s2, %s1053_s2 }
  0x2a   :  { %1183 = vmatprep.subr.bf16.mxu0 %v1494_v0  ;;  %v60_v8 = vadd.f32 %v59_v6, %v58_v4  ;;  %v66_v9 = vrot.slane %v65_v7, 4  ;;  %v1540_v22 = vsub.s32 0, %v1536_v16  ;;  %v1544_v28 = vsub.s32 1, %v1536_v16  ;;  %v1548_v32 = vld [vmem:[#allocation7] sm:$0xff]  ;;  %1202 = vmatpush3.bf16.msra.mxu1 %v1339_v41  ;;  %v1341_v43 = vld [vmem:[#allocation5 + $0x68] sm:$0xff]   ;;  %v1343_v45 = vld [vmem:[#allocation5 + $0x58] sm:$0xff]   ;;  %p1462_p1 = scmp.ne.s32.totalorder %s1053_s2, %s1461_s30  ;;  %p1467_p3 = scmp.lt.s32.totalorder %s1461_s30, %s1461_s30 }
  0x2b   :  { %1203 = vmatprep.subr.bf16.mxu1 %v1494_v0  ;;  %v1342_v44 = vld [vmem:[#allocation5 + $0x60] sm:$0xff]   ;;  %v1344_v46 = vld [vmem:[#allocation5 + $0x50] sm:$0xff]   ;;  %v1345_v47 = vld [vmem:[#allocation5 + $0x48] sm:$0xff]   ;;  %v1565_v49 = vsub.s32 2, %v1536_v16 }
  0x2c   :  { %v61_v12 = vrot.slane %v60_v8, 2  ;;  %v67_v13 = vadd.f32 %v66_v9, %v65_v7  ;;  %v88_v37 = vrot.slane %v1548_v32, %v1544_v28  ;;  %v1346_v48 = vld [vmem:[#allocation5 + $0x40] sm:$0xff]   ;;  %p1468_p4 = por %p1467_p3, %p1466_p2 }
  0x2d   :  { %1184 = vmatpush3.bf16.msra.mxu0 %v1332_v2  ;;  %v110_v50 = vrot.slane %v1548_v32, %v1565_v49 }
  0x2e   :  { %1185 = vmatprep.subr.bf16.mxu0 %v1494_v0  ;;  %v62_v14 = vadd.f32 %v61_v12, %v60_v8  ;;  %v68_v15 = vrot.slane %v67_v13, 2  ;;  %1204 = vmatpush3.bf16.msra.mxu1 %v1340_v42  ;;  %v1573_v12 = vsub.s32 4, %v1536_v16  ;;  %p1469_p5 = pnand %p1468_p4, %p1462_p1 }
  0x2f   :  { %1205 = vmatprep.subr.bf16.mxu1 %v1494_v0 }
  0x30   :  { %v63_v18 = vrot.slane %v62_v14, 1  ;;  %v69_v19 = vadd.f32 %v68_v15, %v67_v13 }
  0x31   :  { %1186 = vmatpush3.bf16.msra.mxu0 %v1333_v3 }
  0x32   :  { %1187 = vmatprep.subr.bf16.mxu0 %v1494_v0  ;;  %v64_v20 = vadd.f32 %v63_v18, %v62_v14  ;;  %v70_v21 = vrot.slane %v69_v19, 1  ;;  %1206 = vmatpush3.bf16.msra.mxu1 %v1341_v43  ;;  %v228_v18 = vrot.slane %v1548_v32, %v1573_v12 }
  0x33   :  { %1207 = vmatprep.subr.bf16.mxu1 %v1494_v0 }
  0x34   :  { %v71_v24 = vadd.f32 %v70_v21, %v69_v19  ;;  %v72_v25 = vmul.f32 0.125, %v64_v20 }
  0x35   :  { %1188 = vmatpush3.bf16.msra.mxu0 %v1334_v5 }
  0x36   :  { %1189 = vmatprep.subr.bf16.mxu0 %v1494_v0  ;;  %v73_v26 = vmul.f32 0.125, %v71_v24  ;;  %v74_v27 = vmul.f32 %v72_v25, %v72_v25  ;;  %v79_v35 = vsub.f32 %v58_v4, %v72_v25  ;;  %1208 = vmatpush3.bf16.msra.mxu1 %v1342_v44  ;;  %v1348_v24 = vld [vmem:[#allocation5 + $0xb0] sm:$0xff]   ;;  %v1349_v25 = vld [vmem:[#allocation5 + $0xa8] sm:$0xff]  }
  0x37   :  { %1209 = vmatprep.subr.bf16.mxu1 %v1494_v0 }
  0x38   :  { %v75_v30 = vsub.f32 %v73_v26, %v74_v27  ;;  %v1350_v26 = vld [vmem:[#allocation5 + $0xa0] sm:$0xff]   ;;  %v1351_v27 = vld [vmem:[#allocation5 + $0x98] sm:$0xff]  }
  0x39   :  { %1190 = vmatpush3.bf16.msra.mxu0 %v1335_v11  ;;  %v1570_v11 = vsub.s32 3, %v1536_v16 }
  0x3a   :  { %1191 = vmatprep.subr.bf16.mxu0 %v1494_v0  ;;  %v76_v31 = vadd.f32 1e-05, %v75_v30  ;;  %1210 = vmatpush3.bf16.msra.mxu1 %v1343_v45  ;;  %v1353_v30 = vld [vmem:[#allocation5 + $0x88] sm:$0xff]  }
  0x3b   :  { %1211 = vmatprep.subr.bf16.mxu1 %v1494_v0 }
  0x3c   :  { %1387 = vrsqrt.f32 %v76_v31  ;;  %v1354_v31 = vld [vmem:[#allocation5 + $0x80] sm:$0xff]  }
  0x3d   :  { %1192 = vmatpush3.bf16.msra.mxu0 %v1336_v17 }
  0x3e   :  { %1193 = vmatprep.subr.bf16.mxu0 %v1494_v0  ;;  %1212 = vmatpush3.bf16.msra.mxu1 %v1344_v46 }
  0x3f   :  { %1213 = vmatprep.subr.bf16.mxu1 %v1494_v0 }
  0x41   :  { %1194 = vmatpush3.bf16.msra.mxu0 %v1337_v23  ;;  %v1347_v23 = vld [vmem:[#allocation5 + $0xb8] sm:$0xff]  }
  0x42   :  { %1195 = vmatprep.subr.bf16.mxu0 %v1494_v0  ;;  %1214 = vmatpush3.bf16.msra.mxu1 %v1345_v47 }
  0x43   :  { %1215 = vmatprep.subr.bf16.mxu1 %v1494_v0 }
  0x45   :  { %1196 = vmatpush3.bf16.msra.mxu0 %v1338_v29  ;;  %v1352_v29 = vld [vmem:[#allocation5 + $0x90] sm:$0xff]  }
  0x46   :  { %1221 = vmatprep.subr.bf16.mxu0 %v1494_v0  ;;  %1216 = vmatpush3.bf16.msra.mxu1 %v1346_v48 }
  0x47   :  { %1241 = vmatprep.subr.bf16.mxu1 %v1494_v0 }
  0x49   :  { %v1388_v33 = vpop.eup %1387 }
  0x4a   :  { %v78_v34 = vmul.f32 %v1388_v33, %v1548_v32  ;;  %v250_v33 = vsub.s32 5, %v1536_v16 }
  0x4c   :  { %v83_v36 = vrot.slane %v78_v34, %v1540_v22  ;;  %v251_v34 = vrot.slane %v1548_v32, %v250_v33 }
  0x4e   :  { %v84_v38 = vmul.f32 %v83_v36, %v79_v35 }
  0x50   :  { %v89_v39 = vadd.f32 %v88_v37, %v84_v38 }
  0x52   :  { %v90_v40 = vpack.c.bf16 %v89_v39, %v89_v39 }
  0x54   :  { %1198 = vmatmul.mubr.bf16.vlgmr.msra.gmra.mxu0 %v90_v40 }
  0x55   :  { %1237 = vmatprep.mubr.msk.bf16.mxu0 %vm1495_vm0, %v1494_v0  ;;  %1222 = vmatpush3.bf16.msra.mxu0 %v1347_v23 }
  0x56   :  { %1223 = vmatprep.subr.bf16.mxu0 %v1494_v0 }
  0x59   :  { %1224 = vmatpush3.bf16.msra.mxu0 %v1348_v24 }
  0x5a   :  { %1225 = vmatprep.subr.bf16.mxu0 %v1494_v0 }
  0x5d   :  { %1226 = vmatpush3.bf16.msra.mxu0 %v1349_v25 }
  0x5e   :  { %1227 = vmatprep.subr.bf16.mxu0 %v1494_v0 }
  0x61   :  { %1228 = vmatpush3.bf16.msra.mxu0 %v1350_v26 }
  0x62   :  { %1229 = vmatprep.subr.bf16.mxu0 %v1494_v0 }
  0x65   :  { %1230 = vmatpush3.bf16.msra.mxu0 %v1351_v27 }
  0x66   :  { %1231 = vmatprep.subr.bf16.mxu0 %v1494_v0 }
  0x69   :  { %1232 = vmatpush3.bf16.msra.mxu0 %v1352_v29 }
  0x6a   :  { %1233 = vmatprep.subr.bf16.mxu0 %v1494_v0 }
  0x6d   :  { %1234 = vmatpush3.bf16.msra.mxu0 %v1353_v30 }
  0x6e   :  { %1235 = vmatprep.subr.bf16.mxu0 %v1494_v0 }
  0x71   :  { %1236 = vmatpush3.bf16.msra.mxu0 %v1354_v31 }
  0x72   :  { %1261 = vmatprep.subr.bf16.mxu0 %v1494_v0 }
 0x114   :  { %v193_v51 = vpop.f32.mrf.mxu0 }
 0x115   :  { %v194_v52 = vadd.f32 %v193_v51, %v110_v50 }
 0x116   :  { %v1199_v53 = vpop.f32.mrf.mxu0 }
 0x117   :  { %v199_v54 = vrot.slane %v194_v52, 4  ;;  %v205_v55 = vmul.f32 %v194_v52, %v194_v52 }
 0x118   :  { %v196_v56 = vpop.f32.mrf.mxu0 }
 0x119   :  { %v200_v57 = vadd.f32 %v199_v54, %v194_v52  ;;  %v206_v58 = vrot.slane %v205_v55, 4 }
 0x11a   :  { %v1200_v59 = vpop.f32.mrf.mxu0 }
 0x11b   :  { %v201_v60 = vrot.slane %v200_v57, 2  ;;  %v207_v61 = vadd.f32 %v206_v58, %v205_v55  ;;  %v363_v59 = vsub.s32 6, %v1536_v16 }
 0x11d   :  { %v202_v62 = vadd.f32 %v201_v60, %v200_v57  ;;  %v208_v63 = vrot.slane %v207_v61, 2  ;;  %v368_v60 = vsub.s32 7, %v1536_v16  ;;  %v1383_v16 = vld [vmem:[#allocation5 + $0x198] sm:$0xff]  }
 0x11f   :  { %v203_v1 = vrot.slane %v202_v62, 1  ;;  %v209_v2 = vadd.f32 %v208_v63, %v207_v61 }
 0x121   :  { %v210_v3 = vrot.slane %v209_v2, 1  ;;  %v204_v4 = vadd.f32 %v203_v1, %v202_v62 }
 0x123   :  { %v211_v5 = vadd.f32 %v210_v3, %v209_v2  ;;  %v212_v6 = vmul.f32 0.125, %v204_v4  ;;  %v369_v2 = vrot.slane %v1548_v32, %v368_v60 }
 0x125   :  { %v213_v7 = vmul.f32 0.125, %v211_v5  ;;  %v214_v8 = vmul.f32 %v212_v6, %v212_v6  ;;  %v219_v15 = vsub.f32 %v194_v52, %v212_v6  ;;  %v1355_v6 = vld [vmem:[#allocation5 + $0xf8] sm:$0xff]  }
 0x127   :  { %v215_v9 = vsub.f32 %v213_v7, %v214_v8  ;;  %v1356_v7 = vld [vmem:[#allocation5 + $0xf0] sm:$0xff]   ;;  %v1357_v8 = vld [vmem:[#allocation5 + $0xe8] sm:$0xff]  }
 0x129   :  { %v216_v10 = vadd.f32 1e-05, %v215_v9  ;;  %v1358_v9 = vld [vmem:[#allocation5 + $0xe0] sm:$0xff]  }
 0x12b   :  { %1389 = vrsqrt.f32 %v216_v10  ;;  %v1360_v10 = vld [vmem:[#allocation5 + $0xd0] sm:$0xff]  }
 0x138   :  { %v1390_v13 = vpop.eup %1389 }
 0x139   :  { %v218_v14 = vmul.f32 %v1390_v13, %v1548_v32  ;;  %v1361_v13 = vld [vmem:[#allocation5 + $0xc8] sm:$0xff]  }
 0x13b   :  { %v223_v17 = vrot.slane %v218_v14, %v1570_v11  ;;  %v1362_v14 = vld [vmem:[#allocation5 + $0xc0] sm:$0xff]  }
 0x13d   :  { %v224_v19 = vmul.f32 %v223_v17, %v219_v15  ;;  %v1611_v15 = vld [vmem:[#allocation7 + $0x8] sm:$0xff] }
 0x13e   :  { %v392_v17 = vrot.slane %v1611_v15, %v1540_v22 }
 0x13f   :  { %v229_v20 = vadd.f32 %v228_v18, %v224_v19 }
 0x141   :  { %v230_v21 = vpack.c.bf16 %v229_v20, %v229_v20 }
 0x143   :  { %1218 = vmatmul.mubr.bf16.vlgmr.msra.gmra.mxu1 %v230_v21 }
 0x144   :  { %1257 = vmatprep.mubr.msk.bf16.mxu1 %vm1495_vm0, %v1494_v0  ;;  %1242 = vmatpush3.bf16.msra.mxu1 %v1355_v6 }
 0x145   :  { %1243 = vmatprep.subr.bf16.mxu1 %v1494_v0 }
 0x148   :  { %1244 = vmatpush3.bf16.msra.mxu1 %v1356_v7 }
 0x149   :  { %1245 = vmatprep.subr.bf16.mxu1 %v1494_v0 }
 0x14c   :  { %1246 = vmatpush3.bf16.msra.mxu1 %v1357_v8 }
 0x14d   :  { %1247 = vmatprep.subr.bf16.mxu1 %v1494_v0 }
 0x150   :  { %1248 = vmatpush3.bf16.msra.mxu1 %v1358_v9 }
 0x151   :  { %1249 = vmatprep.subr.bf16.mxu1 %v1494_v0 }
 0x203   :  { %v334_v35 = vpop.f32.mrf.mxu1 }
 0x204   :  { %v335_v36 = vadd.f32 %v334_v35, %v251_v34 }
 0x205   :  { %v1219_v37 = vpop.f32.mrf.mxu1 }
 0x206   :  { %v340_v38 = vrot.slane %v335_v36, 4  ;;  %v346_v39 = vmul.f32 %v335_v36, %v335_v36 }
 0x207   :  { %v337_v40 = vpop.f32.mrf.mxu1 }
 0x208   :  { %v341_v41 = vadd.f32 %v340_v38, %v335_v36  ;;  %v347_v42 = vrot.slane %v346_v39, 4 }
 0x209   :  { %v1220_v43 = vpop.f32.mrf.mxu1 }
 0x20a   :  { %v342_v44 = vrot.slane %v341_v41, 2  ;;  %v348_v45 = vadd.f32 %v347_v42, %v346_v39 }
 0x20c   :  { %v343_v46 = vadd.f32 %v342_v44, %v341_v41  ;;  %v349_v47 = vrot.slane %v348_v45, 2 }
 0x20e   :  { %v344_v48 = vrot.slane %v343_v46, 1  ;;  %v350_v50 = vadd.f32 %v349_v47, %v348_v45 }
 0x210   :  { %v345_v51 = vadd.f32 %v344_v48, %v343_v46  ;;  %v351_v52 = vrot.slane %v350_v50, 1 }
 0x212   :  { %v352_v53 = vadd.f32 %v351_v52, %v350_v50  ;;  %v353_v54 = vmul.f32 0.125, %v345_v51  ;;  %v510_v50 = vrot.slane %v1611_v15, %v1565_v49 }
 0x214   :  { %v354_v55 = vmul.f32 0.125, %v352_v53  ;;  %v355_v56 = vmul.f32 %v353_v54, %v353_v54  ;;  %v360_v63 = vsub.f32 %v335_v36, %v353_v54  ;;  %v1363_v54 = vld [vmem:[#allocation5 + $0x138] sm:$0xff]  }
 0x216   :  { %v356_v57 = vsub.f32 %v354_v55, %v355_v56  ;;  %v1364_v55 = vld [vmem:[#allocation5 + $0x130] sm:$0xff]   ;;  %v1365_v56 = vld [vmem:[#allocation5 + $0x128] sm:$0xff]  }
 0x218   :  { %v357_v58 = vadd.f32 1e-05, %v356_v57  ;;  %v1366_v57 = vld [vmem:[#allocation5 + $0x120] sm:$0xff]  }
 0x21a   :  { %1391 = vrsqrt.f32 %v357_v58  ;;  %v1367_v58 = vld [vmem:[#allocation5 + $0x118] sm:$0xff]  }
 0x227   :  { %v1392_v61 = vpop.eup %1391 }
 0x228   :  { %v359_v62 = vmul.f32 %v1392_v61, %v1548_v32  ;;  %v1359_v32 = vld [vmem:[#allocation5 + $0xd8] sm:$0xff]   ;;  %v1368_v61 = vld [vmem:[#allocation5 + $0x110] sm:$0xff]  }
 0x229   :  { %1250 = vmatpush3.bf16.msra.mxu1 %v1359_v32 }
 0x22a   :  { %v364_v1 = vrot.slane %v359_v62, %v363_v59  ;;  %1251 = vmatprep.subr.bf16.mxu1 %v1494_v0  ;;  %v1369_v62 = vld [vmem:[#allocation5 + $0x108] sm:$0xff]  }
 0x22c   :  { %v365_v3 = vmul.f32 %v364_v1, %v360_v63  ;;  %v1370_v63 = vld [vmem:[#allocation5 + $0x100] sm:$0xff]   ;;  %v533_v1 = vrot.slane %v1611_v15, %v1570_v11 }
 0x22d   :  { %1252 = vmatpush3.bf16.msra.mxu1 %v1360_v10 }
 0x22e   :  { %v370_v4 = vadd.f32 %v369_v2, %v365_v3  ;;  %1253 = vmatprep.subr.bf16.mxu1 %v1494_v0 }
 0x230   :  { %v371_v5 = vpack.c.bf16 %v370_v4, %v370_v4 }
 0x231   :  { %1254 = vmatpush3.bf16.msra.mxu1 %v1361_v13 }
 0x232   :  { %1238 = vmatmul.mubr.bf16.vlgmr.msra.gmra.mxu0 %v371_v5  ;;  %1255 = vmatprep.subr.bf16.mxu1 %v1494_v0 }
 0x233   :  { %1277 = vmatprep.mubr.msk.bf16.mxu0 %vm1495_vm0, %v1494_v0  ;;  %1262 = vmatpush3.bf16.msra.mxu0 %v1363_v54 }
 0x234   :  { %1263 = vmatprep.subr.bf16.mxu0 %v1494_v0 }
 0x235   :  { %1256 = vmatpush3.bf16.msra.mxu1 %v1362_v14 }
 0x236   :  { %1281 = vmatprep.subr.bf16.mxu1 %v1494_v0 }
 0x237   :  { %1264 = vmatpush3.bf16.msra.mxu0 %v1364_v55 }
 0x238   :  { %1265 = vmatprep.subr.bf16.mxu0 %v1494_v0 }
 0x23b   :  { %1266 = vmatpush3.bf16.msra.mxu0 %v1365_v56 }
 0x23c   :  { %1267 = vmatprep.subr.bf16.mxu0 %v1494_v0 }
 0x23f   :  { %1268 = vmatpush3.bf16.msra.mxu0 %v1366_v57 }
 0x240   :  { %1269 = vmatprep.subr.bf16.mxu0 %v1494_v0 }
 0x243   :  { %1270 = vmatpush3.bf16.msra.mxu0 %v1367_v58 }
 0x244   :  { %1271 = vmatprep.subr.bf16.mxu0 %v1494_v0 }
 0x247   :  { %1272 = vmatpush3.bf16.msra.mxu0 %v1368_v61 }
 0x248   :  { %1273 = vmatprep.subr.bf16.mxu0 %v1494_v0 }
 0x24b   :  { %1274 = vmatpush3.bf16.msra.mxu0 %v1369_v62 }
 0x24c   :  { %1275 = vmatprep.subr.bf16.mxu0 %v1494_v0 }
 0x24f   :  { %1276 = vmatpush3.bf16.msra.mxu0 %v1370_v63 }
 0x250   :  { %1301 = vmatprep.subr.bf16.mxu0 %v1494_v0 }
 0x2f2   :  { %v475_v18 = vpop.f32.mrf.mxu0 }
 0x2f3   :  { %v476_v19 = vadd.f32 %v475_v18, %v392_v17 }
 0x2f4   :  { %v1239_v20 = vpop.f32.mrf.mxu0 }
 0x2f5   :  { %v481_v21 = vrot.slane %v476_v19, 4  ;;  %v487_v23 = vmul.f32 %v476_v19, %v476_v19 }
 0x2f6   :  { %v478_v24 = vpop.f32.mrf.mxu0 }
 0x2f7   :  { %v482_v25 = vadd.f32 %v481_v21, %v476_v19  ;;  %v488_v26 = vrot.slane %v487_v23, 4 }
 0x2f8   :  { %v1240_v27 = vpop.f32.mrf.mxu0 }
 0x2f9   :  { %v483_v29 = vrot.slane %v482_v25, 2  ;;  %v489_v30 = vadd.f32 %v488_v26, %v487_v23 }
 0x2fb   :  { %v484_v31 = vadd.f32 %v483_v29, %v482_v25  ;;  %v490_v34 = vrot.slane %v489_v30, 2 }
 0x2fd   :  { %v485_v35 = vrot.slane %v484_v31, 1  ;;  %v491_v36 = vadd.f32 %v490_v34, %v489_v30  ;;  %v651_v34 = vrot.slane %v1611_v15, %v250_v33  ;;  %v1374_v33 = vld [vmem:[#allocation5 + $0x160] sm:$0xff]  }
 0x2ff   :  { %v486_v37 = vadd.f32 %v485_v35, %v484_v31  ;;  %v492_v38 = vrot.slane %v491_v36, 1 }
 0x301   :  { %v493_v39 = vadd.f32 %v492_v38, %v491_v36  ;;  %v494_v40 = vmul.f32 0.125, %v486_v37 }
 0x303   :  { %v495_v41 = vmul.f32 0.125, %v493_v39  ;;  %v496_v42 = vmul.f32 %v494_v40, %v494_v40  ;;  %v501_v47 = vsub.f32 %v476_v19, %v494_v40  ;;  %v1371_v40 = vld [vmem:[#allocation5 + $0x178] sm:$0xff]  }
 0x305   :  { %v497_v43 = vsub.f32 %v495_v41, %v496_v42  ;;  %v1372_v41 = vld [vmem:[#allocation5 + $0x170] sm:$0xff]   ;;  %v1373_v42 = vld [vmem:[#allocation5 + $0x168] sm:$0xff]  }
 0x307   :  { %v498_v44 = vadd.f32 1e-05, %v497_v43  ;;  %v1375_v43 = vld [vmem:[#allocation5 + $0x158] sm:$0xff]  }
 0x309   :  { %1393 = vrsqrt.f32 %v498_v44  ;;  %v1376_v44 = vld [vmem:[#allocation5 + $0x150] sm:$0xff]  }
 0x316   :  { %v1394_v45 = vpop.eup %1393 }
 0x317   :  { %v500_v46 = vmul.f32 %v1394_v45, %v1611_v15  ;;  %v1377_v45 = vld [vmem:[#allocation5 + $0x148] sm:$0xff]  }
 0x319   :  { %v505_v48 = vrot.slane %v500_v46, %v1544_v28  ;;  %v1378_v46 = vld [vmem:[#allocation5 + $0x140] sm:$0xff]  }
 0x31b   :  { %v506_v51 = vmul.f32 %v505_v48, %v501_v47  ;;  %v674_v47 = vrot.slane %v1611_v15, %v363_v59 }
 0x31d   :  { %v511_v52 = vadd.f32 %v510_v50, %v506_v51 }
 0x31f   :  { %v512_v53 = vpack.c.bf16 %v511_v52, %v511_v52 }
 0x321   :  { %1258 = vmatmul.mubr.bf16.vlgmr.msra.gmra.mxu1 %v512_v53 }
 0x322   :  { %1297 = vmatprep.mubr.msk.bf16.mxu1 %vm1495_vm0, %v1494_v0  ;;  %1282 = vmatpush3.bf16.msra.mxu1 %v1371_v40 }
 0x323   :  { %1283 = vmatprep.subr.bf16.mxu1 %v1494_v0 }
 0x326   :  { %1284 = vmatpush3.bf16.msra.mxu1 %v1372_v41 }
 0x327   :  { %1285 = vmatprep.subr.bf16.mxu1 %v1494_v0 }
 0x32a   :  { %1286 = vmatpush3.bf16.msra.mxu1 %v1373_v42 }
 0x32b   :  { %1287 = vmatprep.subr.bf16.mxu1 %v1494_v0 }
 0x32e   :  { %1288 = vmatpush3.bf16.msra.mxu1 %v1374_v33 }
 0x32f   :  { %1289 = vmatprep.subr.bf16.mxu1 %v1494_v0 }
 0x332   :  { %1290 = vmatpush3.bf16.msra.mxu1 %v1375_v43 }
 0x333   :  { %1291 = vmatprep.subr.bf16.mxu1 %v1494_v0 }
 0x336   :  { %1292 = vmatpush3.bf16.msra.mxu1 %v1376_v44 }
 0x337   :  { %1293 = vmatprep.subr.bf16.mxu1 %v1494_v0 }
 0x33a   :  { %1294 = vmatpush3.bf16.msra.mxu1 %v1377_v45 }
 0x33b   :  { %1295 = vmatprep.subr.bf16.mxu1 %v1494_v0 }
 0x33e   :  { %1296 = vmatpush3.bf16.msra.mxu1 %v1378_v46 }
 0x3e1   :  { %v616_v2 = vpop.f32.mrf.mxu1 }
 0x3e2   :  { %v617_v3 = vadd.f32 %v616_v2, %v533_v1 }
 0x3e3   :  { %v1259_v4 = vpop.f32.mrf.mxu1 }
 0x3e4   :  { %v622_v5 = vrot.slane %v617_v3, 4  ;;  %v628_v6 = vmul.f32 %v617_v3, %v617_v3 }
 0x3e5   :  { %v619_v7 = vpop.f32.mrf.mxu1 }
 0x3e6   :  { %v623_v8 = vadd.f32 %v622_v5, %v617_v3  ;;  %v629_v9 = vrot.slane %v628_v6, 4 }
 0x3e7   :  { %v1260_v32 = vpop.f32.mrf.mxu1 }
 0x3e8   :  { %v624_v10 = vrot.slane %v623_v8, 2  ;;  %v630_v13 = vadd.f32 %v629_v9, %v628_v6 }
 0x3ea   :  { %v625_v14 = vadd.f32 %v624_v10, %v623_v8  ;;  %v631_v17 = vrot.slane %v630_v13, 2  ;;  %v1648_v10 = vld [vmem:[#allocation7 + $0x10] sm:$0x1f] }
 0x3ec   :  { %v626_v18 = vrot.slane %v625_v14, 1  ;;  %v632_v19 = vadd.f32 %v631_v17, %v630_v13 }
 0x3ee   :  { %v627_v20 = vadd.f32 %v626_v18, %v625_v14  ;;  %v633_v21 = vrot.slane %v632_v19, 1  ;;  %v792_v18 = vrot.slane %v1648_v10, %v1540_v22  ;;  %v1384_v22 = vld [vmem:[#allocation5 + $0x190] sm:$0xff]  }
 0x3f0   :  { %v634_v23 = vadd.f32 %v633_v21, %v632_v19  ;;  %v635_v24 = vmul.f32 0.125, %v627_v20 }
 0x3f2   :  { %v636_v25 = vmul.f32 0.125, %v634_v23  ;;  %v637_v26 = vmul.f32 %v635_v24, %v635_v24  ;;  %v642_v35 = vsub.f32 %v617_v3, %v635_v24  ;;  %v1379_v23 = vld [vmem:[#allocation5 + $0x1b8] sm:$0xff]   ;;  %v1380_v24 = vld [vmem:[#allocation5 + $0x1b0] sm:$0xff]  }
 0x3f4   :  { %v638_v27 = vsub.f32 %v636_v25, %v637_v26  ;;  %v1382_v25 = vld [vmem:[#allocation5 + $0x1a0] sm:$0xff]  }
 0x3f5   :  { %v1386_v26 = vld [vmem:[#allocation5 + $0x180] sm:$0xff]  }
 0x3f6   :  { %v639_v29 = vadd.f32 1e-05, %v638_v27  ;;  %v815_v27 = vrot.slane %v1648_v10, %v1544_v28 }
 0x3f8   :  { %1395 = vrsqrt.f32 %v639_v29 }
 0x405   :  { %v1396_v30 = vpop.eup %1395 }
 0x406   :  { %v641_v31 = vmul.f32 %v1396_v30, %v1611_v15 }
 0x408   :  { %v646_v36 = vrot.slane %v641_v31, %v1573_v12 }
 0x40a   :  { %v647_v37 = vmul.f32 %v646_v36, %v642_v35 }
 0x40c   :  { %v652_v38 = vadd.f32 %v651_v34, %v647_v37 }
 0x40e   :  { %v653_v39 = vpack.c.bf16 %v652_v38, %v652_v38 }
 0x410   :  { %1278 = vmatmul.mubr.bf16.vlgmr.msra.gmra.mxu0 %v653_v39 }
 0x411   :  { %1317 = vmatprep.mubr.msk.bf16.mxu0 %vm1495_vm0, %v1494_v0  ;;  %1302 = vmatpush3.bf16.msra.mxu0 %v1379_v23 }
 0x412   :  { %1303 = vmatprep.subr.bf16.mxu0 %v1494_v0 }
 0x415   :  { %1304 = vmatpush3.bf16.msra.mxu0 %v1380_v24 }
 0x416   :  { %1305 = vmatprep.subr.bf16.mxu0 %v1494_v0 }
 0x4d0   :  { %v757_v48 = vpop.f32.mrf.mxu0 }
 0x4d1   :  { %v758_v50 = vadd.f32 %v757_v48, %v674_v47 }
 0x4d2   :  { %v1279_v51 = vpop.f32.mrf.mxu0 }
 0x4d3   :  { %v763_v52 = vrot.slane %v758_v50, 4  ;;  %v769_v53 = vmul.f32 %v758_v50, %v758_v50 }
 0x4d4   :  { %v760_v54 = vpop.f32.mrf.mxu0 }
 0x4d5   :  { %v764_v55 = vadd.f32 %v763_v52, %v758_v50  ;;  %v770_v56 = vrot.slane %v769_v53, 4 }
 0x4d6   :  { %v1280_v57 = vpop.f32.mrf.mxu0 }
 0x4d7   :  { %v765_v58 = vrot.slane %v764_v55, 2  ;;  %v771_v61 = vadd.f32 %v770_v56, %v769_v53  ;;  %v933_v56 = vrot.slane %v1648_v10, %v1570_v11 }
 0x4d9   :  { %v766_v62 = vadd.f32 %v765_v58, %v764_v55  ;;  %v772_v63 = vrot.slane %v771_v61, 2 }
 0x4db   :  { %v767_v1 = vrot.slane %v766_v62, 1  ;;  %v773_v2 = vadd.f32 %v772_v63, %v771_v61 }
 0x4dd   :  { %v768_v3 = vadd.f32 %v767_v1, %v766_v62  ;;  %v774_v4 = vrot.slane %v773_v2, 1  ;;  %v956_v62 = vrot.slane %v1648_v10, %v1573_v12 }
 0x4df   :  { %v775_v5 = vadd.f32 %v774_v4, %v773_v2  ;;  %v776_v6 = vmul.f32 0.125, %v768_v3 }
 0x4e1   :  { %v777_v59 = vmul.f32 0.125, %v775_v5  ;;  %v778_v7 = vmul.f32 %v776_v6, %v776_v6  ;;  %v783_v14 = vsub.f32 %v758_v50, %v776_v6 }
 0x4e3   :  { %v779_v8 = vsub.f32 %v777_v59, %v778_v7 }
 0x4e5   :  { %v780_v9 = vadd.f32 1e-05, %v779_v8 }
 0x4e7   :  { %1397 = vrsqrt.f32 %v780_v9 }
 0x4f4   :  { %v1398_v32 = vpop.eup %1397 }
 0x4f5   :  { %v782_v13 = vmul.f32 %v1398_v32, %v1611_v15  ;;  %v1381_v15 = vld [vmem:[#allocation5 + $0x1a8] sm:$0xff]  }
 0x4f6   :  { %1306 = vmatpush3.bf16.msra.mxu0 %v1381_v15 }
 0x4f7   :  { %v787_v17 = vrot.slane %v782_v13, %v368_v60  ;;  %1307 = vmatprep.subr.bf16.mxu0 %v1494_v0  ;;  %v1385_v60 = vld [vmem:[#allocation5 + $0x188] sm:$0xff]  }
 0x4f9   :  { %v788_v19 = vmul.f32 %v787_v17, %v783_v14 }
 0x4fa   :  { %1308 = vmatpush3.bf16.msra.mxu0 %v1382_v25 }
 0x4fb   :  { %v793_v20 = vadd.f32 %v792_v18, %v788_v19  ;;  %1309 = vmatprep.subr.bf16.mxu0 %v1494_v0 }
 0x4fd   :  { %v794_v21 = vpack.c.bf16 %v793_v20, %v793_v20 }
 0x4fe   :  { %1310 = vmatpush3.bf16.msra.mxu0 %v1383_v16 }
 0x4ff   :  { %1298 = vmatmul.mubr.bf16.vlgmr.msra.gmra.mxu1 %v794_v21  ;;  %1311 = vmatprep.subr.bf16.mxu0 %v1494_v0 }
 0x502   :  { %1312 = vmatpush3.bf16.msra.mxu0 %v1384_v22 }
 0x503   :  { %1313 = vmatprep.subr.bf16.mxu0 %v1494_v0 }
 0x506   :  { %1314 = vmatpush3.bf16.msra.mxu0 %v1385_v60 }
 0x507   :  { %1315 = vmatprep.subr.bf16.mxu0 %v1494_v0 }
 0x50a   :  { %1316 = vmatpush3.bf16.msra.mxu0 %v1386_v26 }
 0x5bf   :  { %v898_v29 = vpop.f32.mrf.mxu1 }
 0x5c0   :  { %v899_v30 = vadd.f32 %v898_v29, %v815_v27 }
 0x5c1   :  { %v1299_v31 = vpop.f32.mrf.mxu1 }
 0x5c2   :  { %v904_v34 = vrot.slane %v899_v30, 4  ;;  %v910_v35 = vmul.f32 %v899_v30, %v899_v30 }
 0x5c3   :  { %v901_v36 = vpop.f32.mrf.mxu1 }
 0x5c4   :  { %v905_v37 = vadd.f32 %v904_v34, %v899_v30  ;;  %v911_v38 = vrot.slane %v910_v35, 4 }
 0x5c5   :  { %v1300_v39 = vpop.f32.mrf.mxu1 }
 0x5c6   :  { %v906_v40 = vrot.slane %v905_v37, 2  ;;  %v912_v41 = vadd.f32 %v911_v38, %v910_v35 }
 0x5c8   :  { %v907_v42 = vadd.f32 %v906_v40, %v905_v37  ;;  %v913_v33 = vrot.slane %v912_v41, 2 }
 0x5ca   :  { %v908_v43 = vrot.slane %v907_v42, 1  ;;  %v914_v44 = vadd.f32 %v913_v33, %v912_v41 }
 0x5cc   :  { %v909_v0 = vadd.f32 %v908_v43, %v907_v42  ;;  %v915_v45 = vrot.slane %v914_v44, 1 }
 0x5ce   :  { %v916_v46 = vadd.f32 %v915_v45, %v914_v44  ;;  %v917_v47 = vmul.f32 0.125, %v909_v0 }
 0x5d0   :  { %v918_v28 = vmul.f32 0.125, %v916_v46  ;;  %v919_v48 = vmul.f32 %v917_v47, %v917_v47  ;;  %v924_v54 = vsub.f32 %v899_v30, %v917_v47 }
 0x5d2   :  { %v920_v50 = vsub.f32 %v918_v28, %v919_v48 }
 0x5d4   :  { %v921_v51 = vadd.f32 1e-05, %v920_v50 }
 0x5d6   :  { %1399 = vrsqrt.f32 %v921_v51 }
 0x5e3   :  { %v1400_v52 = vpop.eup %1399 }
 0x5e4   :  { %v923_v53 = vmul.f32 %v1400_v52, %v1648_v10 }
 0x5e6   :  { %v928_v55 = vrot.slane %v923_v53, %v1565_v49 }
 0x5e8   :  { %v929_v57 = vmul.f32 %v928_v55, %v924_v54 }
 0x5ea   :  { %v934_v58 = vadd.f32 %v933_v56, %v929_v57 }
 0x5ec   :  { %v935_v61 = vpack.c.bf16 %v934_v58, %v934_v58 }
 0x5ee   :  { %1318 = vmatmul.mubr.bf16.vlgmr.msra.gmra.mxu0 %v935_v61 }
 0x6ae   :  { %v1039_v63 = vpop.f32.mrf.mxu0 }
 0x6af   :  { %v1040_v1 = vadd.f32 %v1039_v63, %v956_v62 }
 0x6b0   :  { %v1319_v2 = vpop.f32.mrf.mxu0 }
 0x6b1   :  { %1045 = vst [vmem:[#allocation8] sm:$0xff] %v1040_v1 }
 0x6b2   :  { %v1042_v3 = vpop.f32.mrf.mxu0 }
 0x6b3   :  { %1472 = shalt.err (!%p1469_p5)
}
 0x6b4   :  { %1055 = dma.vmem_to_hbm [thread:$0]  %s1053_s2, 128, %s1676_s3, [#allocation4]   ;;  %v1320_v49 = vpop.f32.mrf.mxu0 }
 0x6b5   :  { %1485 = dma.done.wait [#allocation4], 128  }
 0x6b6   :  { %1486 = vsyncadd [#allocation4], 4294967168 }
 0x6b7   :  { %1059 = vsyncpa [#allocation3], 1 }
 0x6b8   :  { %1060 = vsyncpa [#allocation6], 1 }
 0x6b9   :  { %1061 = vsyncpa [#allocation4], 1 }

</bundles_post_ra>
